<compile_context>
chip_gen: v7x
topology: tpu7x:2x2x1
jax: 0.10.0
libtpu: 0.0.40
codegen_flags: <defaults>
</compile_context>

<pallas_src>
import jax
import jax.numpy as jnp
from jax.experimental import pallas as pl
from jax.experimental.pallas import tpu as pltpu  # noqa: F401  (kept for TPU-specific extensions)


# ----------------------------- Pallas kernel -------------------------------- #
def _softmax_rnn_kernel(x_ref, w_ih_ref, w_comb_ref, b_ref, b_lin_ref,
                        h0_ref, c0_ref,
                        weights_ref, h_last_ref, c_last_ref):
    T, Bp, O = weights_ref.shape         # (T, padded B, dim_out)
    H = w_comb_ref.shape[0]              # w_comb_ref is (H, 4H + O)
    G = 4 * H                            # gate-block width (== 128 here)

    w_comb = w_comb_ref[...]             # (H, 4H+O), loop-invariant stationary RHS

    # ---- prologue: one big input projection with both biases folded in ------ #
    # (T*Bp, D_in) @ (D_in, 4H) + (1, 4H)  ->  (T*Bp, 4H)
    gx = (jnp.dot(x_ref[...], w_ih_ref[...], preferred_element_type=jnp.float32)
          + b_ref[...])

    # ---- serial recurrence, fully unrolled (static T) ----------------------- #
    # Each step's single MXU pass gives gates for step t and logits for h_{t-1}.
    h = h0_ref[...]                      # (Bp, H)
    c = c0_ref[...]                      # (Bp, H)
    logits = [None] * T
    for t in range(T):
        hw = jnp.dot(h, w_comb, preferred_element_type=jnp.float32)   # (Bp, 4H+O)
        if t > 0:
            logits[t - 1] = hw[:, G:]                                  # logits of h_{t-1}
        gates = gx[t * Bp:(t + 1) * Bp, :] + hw[:, :G]                 # (Bp, 4H), [i,f,g,o]
        sig = jax.nn.sigmoid(gates)      # one full-vreg EUP pass (i, f, o reuse it)
        i_g = sig[:, 0 * H:1 * H]
        f_g = sig[:, 1 * H:2 * H]
        o_g = sig[:, 3 * H:4 * H]
        g_g = jnp.tanh(gates[:, 2 * H:3 * H])
        c = f_g * c + i_g * g_g
        h = o_g * jnp.tanh(c)

    h_last_ref[...] = h
    c_last_ref[...] = c

    # logits of the final hidden state: reuse the same stationary RHS, keep tail cols
    logits[T - 1] = jnp.dot(h, w_comb, preferred_element_type=jnp.float32)[:, G:]

    # ---- nn.Softmax() with no dim on a 3-D tensor -> softmax over TIME ------ #
    # whole-block reductions + EUP reciprocal; single full-ref output store
    logits3d = jnp.stack(logits, axis=0) + b_lin_ref[...]              # (T, Bp, O)
    m = jnp.max(logits3d, axis=0, keepdims=True)
    e = jnp.exp(logits3d - m)
    s = jnp.sum(e, axis=0, keepdims=True)
    weights_ref[...] = e * pl.reciprocal(s, approx=True)


# ------------------------------ wrapper / glue ------------------------------- #
def init_params(key, dim_in, dim_hidden, dim_out):
    """Deterministic init mirroring PyTorch's U(-1/sqrt(H), 1/sqrt(H)) shapes."""
    k = 1.0 / float(dim_hidden) ** 0.5
    ks = jax.random.split(key, 6)
    return dict(
        w_ih=jax.random.uniform(ks[0], (4 * dim_hidden, dim_in), jnp.float32, -k, k),
        w_hh=jax.random.uniform(ks[1], (4 * dim_hidden, dim_hidden), jnp.float32, -k, k),
        b_ih=jax.random.uniform(ks[2], (4 * dim_hidden,), jnp.float32, -k, k),
        b_hh=jax.random.uniform(ks[3], (4 * dim_hidden,), jnp.float32, -k, k),
        w_lin=jax.random.uniform(ks[4], (dim_out, dim_hidden), jnp.float32, -k, k),
        b_lin=jax.random.uniform(ks[5], (dim_out,), jnp.float32, -k, k),
    )


def softmax_rnn_forward(x, params, initial_state=None):
    T, B, D_in = x.shape
    H = params["w_hh"].shape[1]
    dim_out = params["w_lin"].shape[0]

    # pad batch up to whole (8, 128) sublane tiles; padded rows are zeros
    Bp = max(8, ((B + 7) // 8) * 8)
    pad_b = Bp - B

    if initial_state is None:
        h0 = jnp.zeros((B, H), jnp.float32)
        c0 = jnp.zeros((B, H), jnp.float32)
    else:
        h0, c0 = initial_state
        h0 = jnp.asarray(h0, jnp.float32).reshape(B, H)
        c0 = jnp.asarray(c0, jnp.float32).reshape(B, H)

    x_p = jnp.pad(x.astype(jnp.float32), ((0, 0), (0, pad_b), (0, 0)))
    h0_p = jnp.pad(h0, ((0, pad_b), (0, 0)))
    c0_p = jnp.pad(c0, ((0, pad_b), (0, 0)))

    # pre-transpose weights so every kernel matmul is (M,K)@(K,N);
    # fuse the recurrent and output weights into one stationary RHS,
    # and fold the two LSTM biases together.
    w_ih_t = jnp.asarray(params["w_ih"].T, jnp.float32)                 # (D_in, 4H)
    w_hh_t = jnp.asarray(params["w_hh"].T, jnp.float32)                 # (H, 4H)
    w_lin_t = jnp.asarray(params["w_lin"].T, jnp.float32)               # (H, dim_out)
    w_comb = jnp.concatenate([w_hh_t, w_lin_t], axis=1)                 # (H, 4H+dim_out)
    b = (params["b_ih"] + params["b_hh"]).reshape(1, 4 * H).astype(jnp.float32)
    b_lin = params["b_lin"].reshape(1, dim_out).astype(jnp.float32)

    # flatten time*batch so the hoisted input projection is a single matmul
    x2d = x_p.reshape(T * Bp, D_in)

    weights_p, h_n_p, c_n_p = pl.pallas_call(
        _softmax_rnn_kernel,
        out_shape=(
            jax.ShapeDtypeStruct((T, Bp, dim_out), jnp.float32),
            jax.ShapeDtypeStruct((Bp, H), jnp.float32),
            jax.ShapeDtypeStruct((Bp, H), jnp.float32),
        ),
        # h0 -> h_n, c0 -> c_n : avoid redundant output buffer init
        input_output_aliases={5: 1, 6: 2},
    )(x2d, w_ih_t, w_comb, b, b_lin, h0_p, c0_p)

    weights = weights_p[:, :B, :]
    h_n = h_n_p[:B]
    c_n = c_n_p[:B]
    last_state = (h_n[None, ...], c_n[None, ...])    # (1, B, H) like PyTorch
    return weights, last_state


# ------------------------------ pure-JAX reference --------------------------- #
def softmax_rnn_reference(x, params, initial_state=None):
    T, B, _ = x.shape
    H = params["w_hh"].shape[1]
    if initial_state is None:
        h = jnp.zeros((B, H), jnp.float32)
        c = jnp.zeros((B, H), jnp.float32)
    else:
        h, c = initial_state
        h = h.reshape(B, H)
        c = c.reshape(B, H)
    b = params["b_ih"] + params["b_hh"]
    hs = []
    for t in range(T):
        gates = x[t] @ params["w_ih"].T + h @ params["w_hh"].T + b
        i, f, g, o = jnp.split(gates, 4, axis=-1)
        i, f, o = jax.nn.sigmoid(i), jax.nn.sigmoid(f), jax.nn.sigmoid(o)
        g = jnp.tanh(g)
        c = f * c + i * g
        h = o * jnp.tanh(c)
        hs.append(h)
    hseq = jnp.stack(hs, axis=0)
    logits = hseq @ params["w_lin"].T + params["b_lin"]
    weights = jax.nn.softmax(logits, axis=0)         # dim=0, matching nn.Softmax()
    return weights, (h[None, ...], c[None, ...])


# ----------------------------------- main ------------------------------------ #
if __name__ == "__main__":
    T, B, DIM_IN, DIM_HIDDEN, DIM_OUT = 8, 2, 4, 32, 16

    key = jax.random.PRNGKey(0)
    k_x, k_p = jax.random.split(key)
    x = jax.random.normal(k_x, (T, B, DIM_IN), jnp.float32)
    params = init_params(k_p, DIM_IN, DIM_HIDDEN, DIM_OUT)

    weights, (h_n, c_n) = jax.jit(softmax_rnn_forward)(x, params)
    jax.block_until_ready((weights, h_n, c_n))

    ref_w, (ref_h, ref_c) = softmax_rnn_reference(x, params)
    assert weights.shape == (T, B, DIM_OUT)
    assert h_n.shape == (1, B, DIM_HIDDEN) and c_n.shape == (1, B, DIM_HIDDEN)
    assert jnp.allclose(weights, ref_w, atol=2e-3, rtol=2e-3)
    assert jnp.allclose(h_n, ref_h, atol=2e-3, rtol=2e-3)
    assert jnp.allclose(c_n, ref_c, atol=2e-3, rtol=2e-3)

    print("KERNEL_OK")
</pallas_src>

<mosaic_0001>
module attributes {stable_mosaic.version = 11 : i64} {
  func.func @_softmax_rnn_kernel(%arg0: memref<64x4xf32, #tpu.memory_space<vmem>>, %arg1: memref<4x128xf32, #tpu.memory_space<vmem>>, %arg2: memref<32x144xf32, #tpu.memory_space<vmem>>, %arg3: memref<1x128xf32, #tpu.memory_space<vmem>>, %arg4: memref<1x16xf32, #tpu.memory_space<vmem>>, %arg5: memref<8x32xf32, #tpu.memory_space<vmem>>, %arg6: memref<8x32xf32, #tpu.memory_space<vmem>>, %arg7: memref<8x8x16xf32, #tpu.memory_space<vmem>>, %arg8: memref<8x32xf32, #tpu.memory_space<vmem>>, %arg9: memref<8x32xf32, #tpu.memory_space<vmem>>) attributes {dimension_semantics = [], scalar_prefetch = 0 : i64, scratch_operands = 0 : i64, tpu.core_type = #tpu.core_type<tc>} {
    %c0 = arith.constant 0 : index
    %c0_0 = arith.constant 0 : index
    %0 = vector.load %arg2[%c0, %c0_0] : memref<32x144xf32, #tpu.memory_space<vmem>>, vector<32x144xf32>
    %c0_1 = arith.constant 0 : index
    %c0_2 = arith.constant 0 : index
    %1 = vector.load %arg0[%c0_1, %c0_2] : memref<64x4xf32, #tpu.memory_space<vmem>>, vector<64x4xf32>
    %c0_3 = arith.constant 0 : index
    %c0_4 = arith.constant 0 : index
    %2 = vector.load %arg1[%c0_3, %c0_4] : memref<4x128xf32, #tpu.memory_space<vmem>>, vector<4x128xf32>
    %cst = arith.constant dense<0.000000e+00> : vector<64x128xf32>
    %3 = tpu.matmul %1, %2, %cst {dimension_numbers = #tpu.dot_dimension_numbers<[1], [0], [0], [1], [0, 0, 1, 1], [], []>} : vector<64x4xf32>, vector<4x128xf32>, vector<64x128xf32> -> vector<64x128xf32>
    %c0_5 = arith.constant 0 : index
    %c0_6 = arith.constant 0 : index
    %4 = vector.load %arg3[%c0_5, %c0_6] : memref<1x128xf32, #tpu.memory_space<vmem>>, vector<1x128xf32>
    %5 = vector.broadcast %4 : vector<1x128xf32> to vector<64x128xf32>
    %6 = arith.addf %3, %5 : vector<64x128xf32>
    %c0_7 = arith.constant 0 : index
    %c0_8 = arith.constant 0 : index
    %7 = vector.load %arg5[%c0_7, %c0_8] : memref<8x32xf32, #tpu.memory_space<vmem>>, vector<8x32xf32>
    %c0_9 = arith.constant 0 : index
    %c0_10 = arith.constant 0 : index
    %8 = vector.load %arg6[%c0_9, %c0_10] : memref<8x32xf32, #tpu.memory_space<vmem>>, vector<8x32xf32>
    %cst_11 = arith.constant dense<0.000000e+00> : vector<8x144xf32>
    %9 = tpu.matmul %7, %0, %cst_11 {dimension_numbers = #tpu.dot_dimension_numbers<[1], [0], [0], [1], [0, 0, 1, 1], [], []>} : vector<8x32xf32>, vector<32x144xf32>, vector<8x144xf32> -> vector<8x144xf32>
    %10 = vector.extract_strided_slice %6 {offsets = [0, 0], sizes = [8, 128], strides = [1, 1]} : vector<64x128xf32> to vector<8x128xf32>
    %11 = vector.extract_strided_slice %9 {offsets = [0, 0], sizes = [8, 128], strides = [1, 1]} : vector<8x144xf32> to vector<8x128xf32>
    %12 = arith.addf %10, %11 : vector<8x128xf32>
    %13 = arith.negf %12 : vector<8x128xf32>
    %14 = math.exp %13 : vector<8x128xf32>
    %cst_12 = arith.constant 1.000000e+00 : f32
    %15 = vector.broadcast %cst_12 : f32 to vector<8x128xf32>
    %16 = arith.addf %15, %14 : vector<8x128xf32>
    %17 = arith.divf %15, %16 : vector<8x128xf32>
    %18 = vector.extract_strided_slice %17 {offsets = [0, 0], sizes = [8, 32], strides = [1, 1]} : vector<8x128xf32> to vector<8x32xf32>
    %19 = vector.extract_strided_slice %17 {offsets = [0, 32], sizes = [8, 32], strides = [1, 1]} : vector<8x128xf32> to vector<8x32xf32>
    %20 = vector.extract_strided_slice %17 {offsets = [0, 96], sizes = [8, 32], strides = [1, 1]} : vector<8x128xf32> to vector<8x32xf32>
    %21 = vector.extract_strided_slice %12 {offsets = [0, 64], sizes = [8, 32], strides = [1, 1]} : vector<8x128xf32> to vector<8x32xf32>
    %22 = math.tanh %21 : vector<8x32xf32>
    %23 = arith.mulf %19, %8 : vector<8x32xf32>
    %24 = arith.mulf %18, %22 : vector<8x32xf32>
    %25 = arith.addf %23, %24 : vector<8x32xf32>
    %26 = math.tanh %25 : vector<8x32xf32>
    %27 = arith.mulf %20, %26 : vector<8x32xf32>
    %cst_13 = arith.constant dense<0.000000e+00> : vector<8x144xf32>
    %28 = tpu.matmul %27, %0, %cst_13 {dimension_numbers = #tpu.dot_dimension_numbers<[1], [0], [0], [1], [0, 0, 1, 1], [], []>} : vector<8x32xf32>, vector<32x144xf32>, vector<8x144xf32> -> vector<8x144xf32>
    %29 = vector.extract_strided_slice %28 {offsets = [0, 128], sizes = [8, 16], strides = [1, 1]} : vector<8x144xf32> to vector<8x16xf32>
    %30 = vector.extract_strided_slice %6 {offsets = [8, 0], sizes = [8, 128], strides = [1, 1]} : vector<64x128xf32> to vector<8x128xf32>
    %31 = vector.extract_strided_slice %28 {offsets = [0, 0], sizes = [8, 128], strides = [1, 1]} : vector<8x144xf32> to vector<8x128xf32>
    %32 = arith.addf %30, %31 : vector<8x128xf32>
    %33 = arith.negf %32 : vector<8x128xf32>
    %34 = math.exp %33 : vector<8x128xf32>
    %cst_14 = arith.constant 1.000000e+00 : f32
    %35 = vector.broadcast %cst_14 : f32 to vector<8x128xf32>
    %36 = arith.addf %35, %34 : vector<8x128xf32>
    %37 = arith.divf %35, %36 : vector<8x128xf32>
    %38 = vector.extract_strided_slice %37 {offsets = [0, 0], sizes = [8, 32], strides = [1, 1]} : vector<8x128xf32> to vector<8x32xf32>
    %39 = vector.extract_strided_slice %37 {offsets = [0, 32], sizes = [8, 32], strides = [1, 1]} : vector<8x128xf32> to vector<8x32xf32>
    %40 = vector.extract_strided_slice %37 {offsets = [0, 96], sizes = [8, 32], strides = [1, 1]} : vector<8x128xf32> to vector<8x32xf32>
    %41 = vector.extract_strided_slice %32 {offsets = [0, 64], sizes = [8, 32], strides = [1, 1]} : vector<8x128xf32> to vector<8x32xf32>
    %42 = math.tanh %41 : vector<8x32xf32>
    %43 = arith.mulf %39, %25 : vector<8x32xf32>
    %44 = arith.mulf %38, %42 : vector<8x32xf32>
    %45 = arith.addf %43, %44 : vector<8x32xf32>
    %46 = math.tanh %45 : vector<8x32xf32>
    %47 = arith.mulf %40, %46 : vector<8x32xf32>
    %cst_15 = arith.constant dense<0.000000e+00> : vector<8x144xf32>
    %48 = tpu.matmul %47, %0, %cst_15 {dimension_numbers = #tpu.dot_dimension_numbers<[1], [0], [0], [1], [0, 0, 1, 1], [], []>} : vector<8x32xf32>, vector<32x144xf32>, vector<8x144xf32> -> vector<8x144xf32>
    %49 = vector.extract_strided_slice %48 {offsets = [0, 128], sizes = [8, 16], strides = [1, 1]} : vector<8x144xf32> to vector<8x16xf32>
    %50 = vector.extract_strided_slice %6 {offsets = [16, 0], sizes = [8, 128], strides = [1, 1]} : vector<64x128xf32> to vector<8x128xf32>
    %51 = vector.extract_strided_slice %48 {offsets = [0, 0], sizes = [8, 128], strides = [1, 1]} : vector<8x144xf32> to vector<8x128xf32>
    %52 = arith.addf %50, %51 : vector<8x128xf32>
    %53 = arith.negf %52 : vector<8x128xf32>
    %54 = math.exp %53 : vector<8x128xf32>
    %cst_16 = arith.constant 1.000000e+00 : f32
    %55 = vector.broadcast %cst_16 : f32 to vector<8x128xf32>
    %56 = arith.addf %55, %54 : vector<8x128xf32>
    %57 = arith.divf %55, %56 : vector<8x128xf32>
    %58 = vector.extract_strided_slice %57 {offsets = [0, 0], sizes = [8, 32], strides = [1, 1]} : vector<8x128xf32> to vector<8x32xf32>
    %59 = vector.extract_strided_slice %57 {offsets = [0, 32], sizes = [8, 32], strides = [1, 1]} : vector<8x128xf32> to vector<8x32xf32>
    %60 = vector.extract_strided_slice %57 {offsets = [0, 96], sizes = [8, 32], strides = [1, 1]} : vector<8x128xf32> to vector<8x32xf32>
    %61 = vector.extract_strided_slice %52 {offsets = [0, 64], sizes = [8, 32], strides = [1, 1]} : vector<8x128xf32> to vector<8x32xf32>
    %62 = math.tanh %61 : vector<8x32xf32>
    %63 = arith.mulf %59, %45 : vector<8x32xf32>
    %64 = arith.mulf %58, %62 : vector<8x32xf32>
    %65 = arith.addf %63, %64 : vector<8x32xf32>
    %66 = math.tanh %65 : vector<8x32xf32>
    %67 = arith.mulf %60, %66 : vector<8x32xf32>
    %cst_17 = arith.constant dense<0.000000e+00> : vector<8x144xf32>
    %68 = tpu.matmul %67, %0, %cst_17 {dimension_numbers = #tpu.dot_dimension_numbers<[1], [0], [0], [1], [0, 0, 1, 1], [], []>} : vector<8x32xf32>, vector<32x144xf32>, vector<8x144xf32> -> vector<8x144xf32>
    %69 = vector.extract_strided_slice %68 {offsets = [0, 128], sizes = [8, 16], strides = [1, 1]} : vector<8x144xf32> to vector<8x16xf32>
    %70 = vector.extract_strided_slice %6 {offsets = [24, 0], sizes = [8, 128], strides = [1, 1]} : vector<64x128xf32> to vector<8x128xf32>
    %71 = vector.extract_strided_slice %68 {offsets = [0, 0], sizes = [8, 128], strides = [1, 1]} : vector<8x144xf32> to vector<8x128xf32>
    %72 = arith.addf %70, %71 : vector<8x128xf32>
    %73 = arith.negf %72 : vector<8x128xf32>
    %74 = math.exp %73 : vector<8x128xf32>
    %cst_18 = arith.constant 1.000000e+00 : f32
    %75 = vector.broadcast %cst_18 : f32 to vector<8x128xf32>
    %76 = arith.addf %75, %74 : vector<8x128xf32>
    %77 = arith.divf %75, %76 : vector<8x128xf32>
    %78 = vector.extract_strided_slice %77 {offsets = [0, 0], sizes = [8, 32], strides = [1, 1]} : vector<8x128xf32> to vector<8x32xf32>
    %79 = vector.extract_strided_slice %77 {offsets = [0, 32], sizes = [8, 32], strides = [1, 1]} : vector<8x128xf32> to vector<8x32xf32>
    %80 = vector.extract_strided_slice %77 {offsets = [0, 96], sizes = [8, 32], strides = [1, 1]} : vector<8x128xf32> to vector<8x32xf32>
    %81 = vector.extract_strided_slice %72 {offsets = [0, 64], sizes = [8, 32], strides = [1, 1]} : vector<8x128xf32> to vector<8x32xf32>
    %82 = math.tanh %81 : vector<8x32xf32>
    %83 = arith.mulf %79, %65 : vector<8x32xf32>
    %84 = arith.mulf %78, %82 : vector<8x32xf32>
    %85 = arith.addf %83, %84 : vector<8x32xf32>
    %86 = math.tanh %85 : vector<8x32xf32>
    %87 = arith.mulf %80, %86 : vector<8x32xf32>
    %cst_19 = arith.constant dense<0.000000e+00> : vector<8x144xf32>
    %88 = tpu.matmul %87, %0, %cst_19 {dimension_numbers = #tpu.dot_dimension_numbers<[1], [0], [0], [1], [0, 0, 1, 1], [], []>} : vector<8x32xf32>, vector<32x144xf32>, vector<8x144xf32> -> vector<8x144xf32>
    %89 = vector.extract_strided_slice %88 {offsets = [0, 128], sizes = [8, 16], strides = [1, 1]} : vector<8x144xf32> to vector<8x16xf32>
    %90 = vector.extract_strided_slice %6 {offsets = [32, 0], sizes = [8, 128], strides = [1, 1]} : vector<64x128xf32> to vector<8x128xf32>
    %91 = vector.extract_strided_slice %88 {offsets = [0, 0], sizes = [8, 128], strides = [1, 1]} : vector<8x144xf32> to vector<8x128xf32>
    %92 = arith.addf %90, %91 : vector<8x128xf32>
    %93 = arith.negf %92 : vector<8x128xf32>
    %94 = math.exp %93 : vector<8x128xf32>
    %cst_20 = arith.constant 1.000000e+00 : f32
    %95 = vector.broadcast %cst_20 : f32 to vector<8x128xf32>
    %96 = arith.addf %95, %94 : vector<8x128xf32>
    %97 = arith.divf %95, %96 : vector<8x128xf32>
    %98 = vector.extract_strided_slice %97 {offsets = [0, 0], sizes = [8, 32], strides = [1, 1]} : vector<8x128xf32> to vector<8x32xf32>
    %99 = vector.extract_strided_slice %97 {offsets = [0, 32], sizes = [8, 32], strides = [1, 1]} : vector<8x128xf32> to vector<8x32xf32>
    %100 = vector.extract_strided_slice %97 {offsets = [0, 96], sizes = [8, 32], strides = [1, 1]} : vector<8x128xf32> to vector<8x32xf32>
    %101 = vector.extract_strided_slice %92 {offsets = [0, 64], sizes = [8, 32], strides = [1, 1]} : vector<8x128xf32> to vector<8x32xf32>
    %102 = math.tanh %101 : vector<8x32xf32>
    %103 = arith.mulf %99, %85 : vector<8x32xf32>
    %104 = arith.mulf %98, %102 : vector<8x32xf32>
    %105 = arith.addf %103, %104 : vector<8x32xf32>
    %106 = math.tanh %105 : vector<8x32xf32>
    %107 = arith.mulf %100, %106 : vector<8x32xf32>
    %cst_21 = arith.constant dense<0.000000e+00> : vector<8x144xf32>
    %108 = tpu.matmul %107, %0, %cst_21 {dimension_numbers = #tpu.dot_dimension_numbers<[1], [0], [0], [1], [0, 0, 1, 1], [], []>} : vector<8x32xf32>, vector<32x144xf32>, vector<8x144xf32> -> vector<8x144xf32>
    %109 = vector.extract_strided_slice %108 {offsets = [0, 128], sizes = [8, 16], strides = [1, 1]} : vector<8x144xf32> to vector<8x16xf32>
    %110 = vector.extract_strided_slice %6 {offsets = [40, 0], sizes = [8, 128], strides = [1, 1]} : vector<64x128xf32> to vector<8x128xf32>
    %111 = vector.extract_strided_slice %108 {offsets = [0, 0], sizes = [8, 128], strides = [1, 1]} : vector<8x144xf32> to vector<8x128xf32>
    %112 = arith.addf %110, %111 : vector<8x128xf32>
    %113 = arith.negf %112 : vector<8x128xf32>
    %114 = math.exp %113 : vector<8x128xf32>
    %cst_22 = arith.constant 1.000000e+00 : f32
    %115 = vector.broadcast %cst_22 : f32 to vector<8x128xf32>
    %116 = arith.addf %115, %114 : vector<8x128xf32>
    %117 = arith.divf %115, %116 : vector<8x128xf32>
    %118 = vector.extract_strided_slice %117 {offsets = [0, 0], sizes = [8, 32], strides = [1, 1]} : vector<8x128xf32> to vector<8x32xf32>
    %119 = vector.extract_strided_slice %117 {offsets = [0, 32], sizes = [8, 32], strides = [1, 1]} : vector<8x128xf32> to vector<8x32xf32>
    %120 = vector.extract_strided_slice %117 {offsets = [0, 96], sizes = [8, 32], strides = [1, 1]} : vector<8x128xf32> to vector<8x32xf32>
    %121 = vector.extract_strided_slice %112 {offsets = [0, 64], sizes = [8, 32], strides = [1, 1]} : vector<8x128xf32> to vector<8x32xf32>
    %122 = math.tanh %121 : vector<8x32xf32>
    %123 = arith.mulf %119, %105 : vector<8x32xf32>
    %124 = arith.mulf %118, %122 : vector<8x32xf32>
    %125 = arith.addf %123, %124 : vector<8x32xf32>
    %126 = math.tanh %125 : vector<8x32xf32>
    %127 = arith.mulf %120, %126 : vector<8x32xf32>
    %cst_23 = arith.constant dense<0.000000e+00> : vector<8x144xf32>
    %128 = tpu.matmul %127, %0, %cst_23 {dimension_numbers = #tpu.dot_dimension_numbers<[1], [0], [0], [1], [0, 0, 1, 1], [], []>} : vector<8x32xf32>, vector<32x144xf32>, vector<8x144xf32> -> vector<8x144xf32>
    %129 = vector.extract_strided_slice %128 {offsets = [0, 128], sizes = [8, 16], strides = [1, 1]} : vector<8x144xf32> to vector<8x16xf32>
    %130 = vector.extract_strided_slice %6 {offsets = [48, 0], sizes = [8, 128], strides = [1, 1]} : vector<64x128xf32> to vector<8x128xf32>
    %131 = vector.extract_strided_slice %128 {offsets = [0, 0], sizes = [8, 128], strides = [1, 1]} : vector<8x144xf32> to vector<8x128xf32>
    %132 = arith.addf %130, %131 : vector<8x128xf32>
    %133 = arith.negf %132 : vector<8x128xf32>
    %134 = math.exp %133 : vector<8x128xf32>
    %cst_24 = arith.constant 1.000000e+00 : f32
    %135 = vector.broadcast %cst_24 : f32 to vector<8x128xf32>
    %136 = arith.addf %135, %134 : vector<8x128xf32>
    %137 = arith.divf %135, %136 : vector<8x128xf32>
    %138 = vector.extract_strided_slice %137 {offsets = [0, 0], sizes = [8, 32], strides = [1, 1]} : vector<8x128xf32> to vector<8x32xf32>
    %139 = vector.extract_strided_slice %137 {offsets = [0, 32], sizes = [8, 32], strides = [1, 1]} : vector<8x128xf32> to vector<8x32xf32>
    %140 = vector.extract_strided_slice %137 {offsets = [0, 96], sizes = [8, 32], strides = [1, 1]} : vector<8x128xf32> to vector<8x32xf32>
    %141 = vector.extract_strided_slice %132 {offsets = [0, 64], sizes = [8, 32], strides = [1, 1]} : vector<8x128xf32> to vector<8x32xf32>
    %142 = math.tanh %141 : vector<8x32xf32>
    %143 = arith.mulf %139, %125 : vector<8x32xf32>
    %144 = arith.mulf %138, %142 : vector<8x32xf32>
    %145 = arith.addf %143, %144 : vector<8x32xf32>
    %146 = math.tanh %145 : vector<8x32xf32>
    %147 = arith.mulf %140, %146 : vector<8x32xf32>
    %cst_25 = arith.constant dense<0.000000e+00> : vector<8x144xf32>
    %148 = tpu.matmul %147, %0, %cst_25 {dimension_numbers = #tpu.dot_dimension_numbers<[1], [0], [0], [1], [0, 0, 1, 1], [], []>} : vector<8x32xf32>, vector<32x144xf32>, vector<8x144xf32> -> vector<8x144xf32>
    %149 = vector.extract_strided_slice %148 {offsets = [0, 128], sizes = [8, 16], strides = [1, 1]} : vector<8x144xf32> to vector<8x16xf32>
    %150 = vector.extract_strided_slice %6 {offsets = [56, 0], sizes = [8, 128], strides = [1, 1]} : vector<64x128xf32> to vector<8x128xf32>
    %151 = vector.extract_strided_slice %148 {offsets = [0, 0], sizes = [8, 128], strides = [1, 1]} : vector<8x144xf32> to vector<8x128xf32>
    %152 = arith.addf %150, %151 : vector<8x128xf32>
    %153 = arith.negf %152 : vector<8x128xf32>
    %154 = math.exp %153 : vector<8x128xf32>
    %cst_26 = arith.constant 1.000000e+00 : f32
    %155 = vector.broadcast %cst_26 : f32 to vector<8x128xf32>
    %156 = arith.addf %155, %154 : vector<8x128xf32>
    %157 = arith.divf %155, %156 : vector<8x128xf32>
    %158 = vector.extract_strided_slice %157 {offsets = [0, 0], sizes = [8, 32], strides = [1, 1]} : vector<8x128xf32> to vector<8x32xf32>
    %159 = vector.extract_strided_slice %157 {offsets = [0, 32], sizes = [8, 32], strides = [1, 1]} : vector<8x128xf32> to vector<8x32xf32>
    %160 = vector.extract_strided_slice %157 {offsets = [0, 96], sizes = [8, 32], strides = [1, 1]} : vector<8x128xf32> to vector<8x32xf32>
    %161 = vector.extract_strided_slice %152 {offsets = [0, 64], sizes = [8, 32], strides = [1, 1]} : vector<8x128xf32> to vector<8x32xf32>
    %162 = math.tanh %161 : vector<8x32xf32>
    %163 = arith.mulf %159, %145 : vector<8x32xf32>
    %164 = arith.mulf %158, %162 : vector<8x32xf32>
    %165 = arith.addf %163, %164 : vector<8x32xf32>
    %166 = math.tanh %165 : vector<8x32xf32>
    %167 = arith.mulf %160, %166 : vector<8x32xf32>
    %c0_27 = arith.constant 0 : index
    %c0_28 = arith.constant 0 : index
    %168 = vector.load %arg8[%c0_27, %c0_28] : memref<8x32xf32, #tpu.memory_space<vmem>>, vector<8x32xf32>
    tpu.vector_store %arg8[%c0_27, %c0_28], %167 {strides = array<i32>} : memref<8x32xf32, #tpu.memory_space<vmem>>, vector<8x32xf32>,
    %c0_29 = arith.constant 0 : index
    %c0_30 = arith.constant 0 : index
    %169 = vector.load %arg9[%c0_29, %c0_30] : memref<8x32xf32, #tpu.memory_space<vmem>>, vector<8x32xf32>
    tpu.vector_store %arg9[%c0_29, %c0_30], %165 {strides = array<i32>} : memref<8x32xf32, #tpu.memory_space<vmem>>, vector<8x32xf32>,
    %cst_31 = arith.constant dense<0.000000e+00> : vector<8x144xf32>
    %170 = tpu.matmul %167, %0, %cst_31 {dimension_numbers = #tpu.dot_dimension_numbers<[1], [0], [0], [1], [0, 0, 1, 1], [], []>} : vector<8x32xf32>, vector<32x144xf32>, vector<8x144xf32> -> vector<8x144xf32>
    %171 = vector.extract_strided_slice %170 {offsets = [0, 128], sizes = [8, 16], strides = [1, 1]} : vector<8x144xf32> to vector<8x16xf32>
    %172 = vector.shape_cast %29 : vector<8x16xf32> to vector<1x8x16xf32>
    %173 = vector.shape_cast %49 : vector<8x16xf32> to vector<1x8x16xf32>
    %174 = vector.shape_cast %69 : vector<8x16xf32> to vector<1x8x16xf32>
    %175 = vector.shape_cast %89 : vector<8x16xf32> to vector<1x8x16xf32>
    %176 = vector.shape_cast %109 : vector<8x16xf32> to vector<1x8x16xf32>
    %177 = vector.shape_cast %129 : vector<8x16xf32> to vector<1x8x16xf32>
    %178 = vector.shape_cast %149 : vector<8x16xf32> to vector<1x8x16xf32>
    %179 = vector.shape_cast %171 : vector<8x16xf32> to vector<1x8x16xf32>
    %180 = tpu.concatenate %172, %173, %174, %175, %176, %177, %178, %179 in 0 : vector<1x8x16xf32>, vector<1x8x16xf32>, vector<1x8x16xf32>, vector<1x8x16xf32>, vector<1x8x16xf32>, vector<1x8x16xf32>, vector<1x8x16xf32>, vector<1x8x16xf32> -> vector<8x8x16xf32>
    %c0_32 = arith.constant 0 : index
    %c0_33 = arith.constant 0 : index
    %181 = vector.load %arg4[%c0_32, %c0_33] : memref<1x16xf32, #tpu.memory_space<vmem>>, vector<1x16xf32>
    %182 = vector.shape_cast %181 : vector<1x16xf32> to vector<1x1x16xf32>
    %183 = vector.broadcast %182 : vector<1x1x16xf32> to vector<8x8x16xf32>
    %184 = arith.addf %180, %183 : vector<8x8x16xf32>
    %cst_34 = arith.constant dense<0xFF800000> : vector<8x16xf32>
    %185 = vector.multi_reduction <maximumf>, %184, %cst_34 [0] : vector<8x8x16xf32> to vector<8x16xf32>
    %186 = vector.shape_cast %185 : vector<8x16xf32> to vector<1x8x16xf32>
    %187 = vector.broadcast %186 : vector<1x8x16xf32> to vector<8x8x16xf32>
    %188 = arith.subf %184, %187 : vector<8x8x16xf32>
    %189 = math.exp %188 : vector<8x8x16xf32>
    %cst_35 = arith.constant dense<0.000000e+00> : vector<8x16xf32>
    %190 = vector.multi_reduction <add>, %189, %cst_35 [0] : vector<8x8x16xf32> to vector<8x16xf32>
    %191 = vector.shape_cast %190 : vector<8x16xf32> to vector<1x8x16xf32>
    %192 = tpu.reciprocal %191 {approx = true} : vector<1x8x16xf32> -> vector<1x8x16xf32>
    %193 = vector.broadcast %192 : vector<1x8x16xf32> to vector<8x8x16xf32>
    %194 = arith.mulf %189, %193 : vector<8x8x16xf32>
    %c0_36 = arith.constant 0 : index
    %c0_37 = arith.constant 0 : index
    %c0_38 = arith.constant 0 : index
    %195 = vector.load %arg7[%c0_36, %c0_37, %c0_38] : memref<8x8x16xf32, #tpu.memory_space<vmem>>, vector<8x8x16xf32>
    tpu.vector_store %arg7[%c0_36, %c0_37, %c0_38], %194 {strides = array<i32>} : memref<8x8x16xf32, #tpu.memory_space<vmem>>, vector<8x8x16xf32>,
    return
  }
}

</mosaic_0001>

<bundles_post_ra>
// kernel: softmax_rnn_forward.1
= control target key start
LH: loop header
LB: loop body
LE: loop exit
PB: predicated region body
PF: predicated region fallthrough
CT: control target
= control target key end

     0   :  { %vm78_vm0 = vcmask 1043456   ;;  %vm53_vm1 = vcmask 31744   ;;  %v1389_v3 = vmov 0.0   ;;  %vm189_vm2 = vcmask 261120   ;;  %s1390_s11 = smov 64   ;;  %s1391_s14 = smov 32   ;;  %s1730_s2 = inlined_call_operand.vmem [shape: f32[32,144], index: 2, kind: input, shape index: {}]   ;;  %s1731_s1 = inlined_call_operand.vmem [shape: f32[4,128], index: 1, kind: input, shape index: {}]   ;;  %s1732_s0 = inlined_call_operand.vmem [shape: f32[64,4], index: 0, kind: input, shape index: {}]   ;;  %s1733_s5 = inlined_call_operand.vmem [shape: f32[8,32], index: 5, kind: input, shape index: {}, may-alias: {5,8}]   ;;  %s1734_s3 = inlined_call_operand.vmem [shape: f32[1,128], index: 3, kind: input, shape index: {}]   ;;  %s1735_s6 = inlined_call_operand.vmem [shape: f32[8,32], index: 6, kind: input, shape index: {}, may-alias: {6,9}]   ;;  %s1736_s4 = inlined_call_operand.vmem [shape: f32[1,16], index: 4, kind: input, shape index: {}]   ;;  %s1737_s9 = inlined_call_operand.vmem [shape: f32[8,32], index: 9, kind: output, shape index: {2}, may-alias: {6,9}]   ;;  %s1738_s8 = inlined_call_operand.vmem [shape: f32[8,32], index: 8, kind: output, shape index: {1}, may-alias: {5,8}]   ;;  %s1739_s7 = inlined_call_operand.vmem [shape: f32[8,8,16], index: 7, kind: output, shape index: {0}]  }
   0x1   :  { %v30_v0 = vld [vmem:[%s1730_s2 + $0x8] sm:$0xff]  ;;  %v32_v1 = vld [vmem:[%s1730_s2 + $0x18] sm:$0xff]  ;;  %v29_v2 = vld [vmem:[%s1730_s2] sm:$0xff]  ;;  %257 = vmatprep.mubr.f32.mxu1 %v1389_v3  ;;  %vm1096_vm3 = vcmask 130048  }
   0x2   :  { %v1453_v4 = vpack.c.bf16 %v32_v1, %v30_v0  ;;  %v31_v5 = vld [vmem:[%s1730_s2 + $0x10] sm:$0xff]  ;;  %v45_v6 = vld [vmem:[%s1731_s1] sm:$0xf]  ;;  %v38_v9 = vld [vmem:[%s1732_s0 + $0x8] sm:$0xff] }
   0x3   :  { %v37_v7 = vld [vmem:[%s1732_s0] sm:$0xff]  ;;  %v1464_v8 = vpack.c.bf16 %v31_v5, %v29_v2  ;;  %1217 = vmatprep.subr.msk.mxu0 %vm78_vm0, %v45_v6  ;;  %v34_v10 = vld [vmem:[%s1730_s2 + $0x28] sm:$0xff]  ;;  %v36_v11 = vld [vmem:[%s1730_s2 + $0x38] sm:$0xff] }
   0x4   :  { %1219 = vmatprep.mubr.msk.f32.mxu0 %vm53_vm1, %v37_v7  ;;  %1232 = vmatprep.subr.bf16.mxu1 %v1453_v4  ;;  %v1479_v12 = vpack.c.bf16 %v36_v11, %v34_v10  ;;  %v33_v13 = vld [vmem:[%s1730_s2 + $0x20] sm:$0xff]  ;;  %v35_v14 = vld [vmem:[%s1730_s2 + $0x30] sm:$0xff]  ;;  %v40_v55 = vld [vmem:[%s1732_s0 + $0x18] sm:$0xff] }
   0x5   :  { %1218 = vmatpush3.msk.msra.mxu0 %vm78_vm0, %v45_v6  ;;  %1234 = vmatpush1.bf16.msra.mxu1 %v1464_v8  ;;  %v1489_v15 = vpack.c.bf16 %v35_v14, %v33_v13  ;;  %v187_v16 = vld [vmem:[%s1733_s5] sm:$0xff]  ;;  %v39_v54 = vld [vmem:[%s1732_s0 + $0x10] sm:$0xff]  ;;  %v42_v57 = vld [vmem:[%s1732_s0 + $0x28] sm:$0xff] }
   0x6   :  { %1220 = vmatmul.mubr.msk.f32.vlgmr.msra.gmra.mrb[0].mxu0 %vm53_vm1, %v38_v9  ;;  %1236 = vmatprep.subr.bf16.mxu1 %v1479_v12  ;;  %v1511_v18 = vld [vmem:[%s1734_s3] ss:$0 sm:$0xff]  ;;  %v43_v58 = vld [vmem:[%s1732_s0 + $0x30] sm:$0xff]  ;;  %v44_v59 = vld [vmem:[%s1732_s0 + $0x38] sm:$0xff] }
   0x7   :  { %1248 = vmatprep.subr.bf16.mxu0 %v1453_v4  ;;  %v188_v25 = vld [vmem:[%s1735_s6] sm:$0xff]  ;;  %1222 = vmatprep.mubr.msk.f32.mxu0 %vm53_vm1, %v39_v54 }
   0x8   :  { %1250 = vmatpush1.bf16.msra.mxu0 %v1464_v8  ;;  %v41_v56 = vld [vmem:[%s1732_s0 + $0x20] sm:$0xff] }
   0x9   :  { %1252 = vmatprep.subr.bf16.mxu0 %v1479_v12  ;;  %1238 = vmatpush1.bf16.msra.mxu1 %v1489_v15 }
   0xa   :  { %1240 = vmatprep.subr.bf16.mxu1 %v1453_v4  ;;  %1223 = vmatmul.mubr.msk.f32.gmra.mrb[2].mxu0 %vm53_vm1, %v40_v55 }
   0xb   :  { %1225 = vmatprep.mubr.msk.f32.mxu0 %vm53_vm1, %v41_v56 }
   0xc   :  { %1254 = vmatpush1.bf16.msra.mxu0 %v1489_v15  ;;  %1190 = vmatmul.mubr.msk.f32.vlgmr.msra.gmra.mrb[0].mxu1 %vm189_vm2, %v187_v16 }
   0xd   :  { %1264 = vmatprep.subr.bf16.mxu0 %v1453_v4  ;;  %1242 = vmatpush1.bf16.msra.mxu1 %v1464_v8 }
   0xe   :  { %361 = vmatprep.mubr.f32.mxu1 %v1389_v3  ;;  %1244 = vmatprep.subr.bf16.mxu1 %v1479_v12 }
   0xf   :  { %1226 = vmatmul.mubr.msk.f32.gmra.mrb[4].mxu0 %vm53_vm1, %v42_v57 }
  0x10   :  { %1228 = vmatprep.mubr.msk.f32.mxu0 %vm53_vm1, %v43_v58 }
  0x11   :  { %1246 = vmatpush1.bf16.msra.mxu1 %v1489_v15 }
  0x12   :  { %1256 = vmatprep.subr.bf16.mxu1 %v1453_v4 }
  0x13   :  { %1229 = vmatmul.mubr.msk.f32.gmra.mrb[6].mxu0 %vm53_vm1, %v44_v59 }
  0x14   :  { %462 = vmatprep.mubr.f32.mxu0 %v1389_v3 }
  0xd9   :  { %v1221_v17 = vpop.f32.mrb[0].mxu0 }
  0xda   :  { %v148_v19 = vpop.f32.mrb[1].mxu0  ;;  %v154_v40 = vadd.f32 %v1221_v17, %v1511_v18 }
  0xdb   :  { %v149_v20 = vadd.f32 %v1511_v18, %v148_v19 }
  0xdd   :  { %v1224_v63 = vpop.f32.mrb[2].mxu0 }
  0xde   :  { %v158_v0 = vpop.f32.mrb[3].mxu0 }
  0xdf   :  { %v259_v21 = vpop.f32.mrb[0].mxu1  ;;  %v159_v9 = vadd.f32 %v1511_v18, %v158_v0 }
  0xe0   :  { %v263_v22 = vadd.f32 %v259_v21, %v149_v20  ;;  %v261_v23 = vpop.f32.mrb[1].mxu1 }
  0xe2   :  { %1307 = vtanh.f32 %v263_v22  ;;  %v1191_v26 = vmul.f32 -1.442695, %v263_v22  ;;  %v1560_v1 = vpop.f32.mrb[4].mxu0 }
  0xe3   :  { %v1562_v2 = vpop.f32.mrb[5].mxu0 }
  0xe4   :  { %1309 = vpow2.f32 %v1191_v26 }
  0xe6   :  { %v1564_v5 = vpop.f32.mrb[6].mxu0 }
  0xe7   :  { %v1566_v6 = vpop.f32.mrb[7].mxu0 }
  0xec   :  { %v1308_v24 = vpop.eup %1307 }
  0xed   :  { %277 = vrot.lane.b32.xlu0 %v1308_v24, %s1390_s11 }
  0xee   :  { %v1310_v27 = vpop.eup %1309 }
  0xef   :  { %v267_v28 = vadd.f32 1.0, %v1310_v27 }
  0xf1   :  { %272 = vrot.lane.b32.xlu0 %v188_v25, %s1391_s14  ;;  %1311 = vrcp.f32 %v267_v28 }
  0xfb   :  { %v1312_v29 = vpop.eup %1311 }
 0x15f   :  { %v278_v30 = vpop.permute.xlu0 %277 }
 0x160   :  { %v280_v31 = vmul.f32 %v1312_v29, %v278_v30  ;;  %v164_v30 = vadd.f32 %v1224_v63, %v1511_v18 }
 0x162   :  { %282 = vrot.lane.b32.xlu1 %v280_v31, %s1391_s14 }
 0x163   :  { %v273_v32 = vpop.permute.xlu0 %272 }
 0x164   :  { %v275_v33 = vmul.f32 %v1312_v29, %v273_v32 }
 0x1d4   :  { %v283_v34 = vpop.permute.xlu1 %282 }
 0x1d5   :  { %v285_v35 = vadd.f32 %v283_v34, %v275_v33 }
 0x1d7   :  { %1313 = vtanh.f32 %v285_v35 }
 0x1e1   :  { %v1314_v36 = vpop.eup %1313 }
 0x1e2   :  { %288 = vrot.lane.b32.xlu1 %v1314_v36, %s1390_s11 }
 0x254   :  { %v289_v37 = vpop.permute.xlu1 %288 }
 0x255   :  { %v291_v38 = vmul.f32 %v1312_v29, %v289_v37 }
 0x257   :  { %293 = vrot.lane.b32.xlu0 %v291_v38, %s1391_s14 }
 0x2c9   :  { %v294_v39 = vpop.permute.xlu0 %293 }
 0x2ca   :  { %1192 = vmatmul.mubr.msk.f32.vlgmr.msra.gmra.mrb[2].mxu1 %vm189_vm2, %v294_v39 }
 0x2cb   :  { %1258 = vmatpush1.bf16.msra.mxu1 %v1464_v8  ;;  %563 = vmatprep.mubr.f32.mxu1 %v1389_v3 }
 0x2cc   :  { %1260 = vmatprep.subr.bf16.mxu1 %v1479_v12 }
 0x2cf   :  { %1262 = vmatpush1.bf16.msra.mxu1 %v1489_v15 }
 0x2d0   :  { %1272 = vmatprep.subr.bf16.mxu1 %v1453_v4 }
 0x39d   :  { %v363_v41 = vpop.f32.mrb[2].mxu1 }
 0x39e   :  { %v368_v42 = vadd.f32 %v363_v41, %v154_v40  ;;  %v1529_v43 = vpop.f32.mrb[3].mxu1 }
 0x3a0   :  { %1315 = vtanh.f32 %v368_v42  ;;  %v1193_v45 = vmul.f32 -1.442695, %v368_v42 }
 0x3a2   :  { %1317 = vpow2.f32 %v1193_v45 }
 0x3aa   :  { %v1316_v44 = vpop.eup %1315 }
 0x3ab   :  { %378 = vrot.lane.b32.xlu1 %v1316_v44, %s1390_s11 }
 0x3ac   :  { %v1318_v46 = vpop.eup %1317 }
 0x3ad   :  { %v372_v47 = vadd.f32 1.0, %v1318_v46 }
 0x3af   :  { %1319 = vrcp.f32 %v372_v47 }
 0x3b9   :  { %v1320_v48 = vpop.eup %1319 }
 0x3ba   :  { %v376_v51 = vmul.f32 %v1320_v48, %v285_v35 }
 0x41d   :  { %v379_v49 = vpop.permute.xlu1 %378 }
 0x41e   :  { %v381_v50 = vmul.f32 %v1320_v48, %v379_v49  ;;  %v169_v49 = vadd.f32 %v1511_v18, %v1562_v2 }
 0x420   :  { %383 = vrot.lane.b32.xlu0 %v381_v50, %s1391_s14 }
 0x492   :  { %v384_v52 = vpop.permute.xlu0 %383 }
 0x493   :  { %v386_v53 = vadd.f32 %v384_v52, %v376_v51 }
 0x495   :  { %1321 = vtanh.f32 %v386_v53 }
 0x49f   :  { %v1322_v60 = vpop.eup %1321 }
 0x4a0   :  { %389 = vrot.lane.b32.xlu1 %v1322_v60, %s1390_s11 }
 0x512   :  { %v390_v61 = vpop.permute.xlu1 %389 }
 0x513   :  { %v392_v62 = vmul.f32 %v1320_v48, %v390_v61 }
 0x515   :  { %394 = vrot.lane.b32.xlu0 %v392_v62, %s1391_s14 }
 0x587   :  { %v395_v7 = vpop.permute.xlu0 %394 }
 0x588   :  { %1194 = vmatmul.mubr.msk.f32.vlgmr.msra.gmra.mrb[8].mxu0 %vm189_vm2, %v395_v7  ;;  %v1616_v7 = vld [vmem:[%s1736_s4] ss:$0 sm:$0xff]  ;;  %s1392_s4 = smov 96  }
 0x589   :  { %1266 = vmatpush1.bf16.msra.mxu0 %v1464_v8  ;;  %664 = vmatprep.mubr.f32.mxu0 %v1389_v3 }
 0x58a   :  { %1268 = vmatprep.subr.bf16.mxu0 %v1479_v12 }
 0x58d   :  { %1270 = vmatpush1.bf16.msra.mxu0 %v1489_v15 }
 0x58e   :  { %1280 = vmatprep.subr.bf16.mxu0 %v1453_v4 }
 0x65b   :  { %v464_v10 = vpop.f32.mrb[8].mxu0 }
 0x65c   :  { %v469_v11 = vadd.f32 %v464_v10, %v159_v9  ;;  %v1575_v13 = vpop.f32.mrb[9].mxu0  ;;  %v174_v9 = vadd.f32 %v1560_v1, %v1511_v18  ;;  %v1622_v10 = vadd.f32 %v1616_v7, %v1529_v43 }
 0x65e   :  { %1323 = vtanh.f32 %v469_v11  ;;  %v1195_v16 = vmul.f32 -1.442695, %v469_v11 }
 0x660   :  { %1325 = vpow2.f32 %v1195_v16 }
 0x668   :  { %v1324_v14 = vpop.eup %1323 }
 0x669   :  { %479 = vrot.lane.b32.xlu1 %v1324_v14, %s1390_s11 }
 0x66a   :  { %v1326_v17 = vpop.eup %1325 }
 0x66b   :  { %v473_v19 = vadd.f32 1.0, %v1326_v17 }
 0x66d   :  { %1327 = vrcp.f32 %v473_v19  ;;  %v1097_v19 = vsel %vm1096_vm3, %v1622_v10, -inf }
 0x677   :  { %v1328_v20 = vpop.eup %1327 }
 0x678   :  { %v477_v23 = vmul.f32 %v1328_v20, %v386_v53 }
 0x6db   :  { %v480_v21 = vpop.permute.xlu1 %479 }
 0x6dc   :  { %v482_v22 = vmul.f32 %v1328_v20, %v480_v21 }
 0x6de   :  { %484 = vrot.lane.b32.xlu0 %v482_v22, %s1391_s14 }
 0x750   :  { %v485_v24 = vpop.permute.xlu0 %484 }
 0x751   :  { %v487_v25 = vadd.f32 %v485_v24, %v477_v23 }
 0x753   :  { %1329 = vtanh.f32 %v487_v25 }
 0x75d   :  { %v1330_v26 = vpop.eup %1329 }
 0x75e   :  { %490 = vrot.lane.b32.xlu1 %v1330_v26, %s1390_s11 }
 0x7d0   :  { %v491_v27 = vpop.permute.xlu1 %490 }
 0x7d1   :  { %v493_v28 = vmul.f32 %v1328_v20, %v491_v27 }
 0x7d3   :  { %495 = vrot.lane.b32.xlu0 %v493_v28, %s1391_s14 }
 0x845   :  { %v496_v29 = vpop.permute.xlu0 %495 }
 0x846   :  { %1196 = vmatmul.mubr.msk.f32.vlgmr.msra.gmra.mrb[4].mxu1 %vm189_vm2, %v496_v29 }
 0x847   :  { %1274 = vmatpush1.bf16.msra.mxu1 %v1464_v8  ;;  %765 = vmatprep.mubr.f32.mxu1 %v1389_v3 }
 0x848   :  { %1276 = vmatprep.subr.bf16.mxu1 %v1479_v12 }
 0x84b   :  { %1278 = vmatpush1.bf16.msra.mxu1 %v1489_v15 }
 0x84c   :  { %1288 = vmatprep.subr.bf16.mxu1 %v1453_v4 }
 0x919   :  { %v565_v31 = vpop.f32.mrb[4].mxu1 }
 0x91a   :  { %v570_v32 = vadd.f32 %v565_v31, %v164_v30  ;;  %v1588_v33 = vpop.f32.mrb[5].mxu1 }
 0x91c   :  { %1331 = vtanh.f32 %v570_v32  ;;  %v1197_v35 = vmul.f32 -1.442695, %v570_v32 }
 0x91e   :  { %1333 = vpow2.f32 %v1197_v35  ;;  %v179_v35 = vadd.f32 %v1511_v18, %v1566_v6 }
 0x926   :  { %v1332_v34 = vpop.eup %1331 }
 0x927   :  { %580 = vrot.lane.b32.xlu1 %v1332_v34, %s1390_s11 }
 0x928   :  { %v1334_v36 = vpop.eup %1333 }
 0x929   :  { %v574_v37 = vadd.f32 1.0, %v1334_v36  ;;  %v1644_v36 = vadd.f32 %v1616_v7, %v1575_v13 }
 0x92b   :  { %1335 = vrcp.f32 %v574_v37 }
 0x935   :  { %v1336_v38 = vpop.eup %1335 }
 0x936   :  { %v578_v41 = vmul.f32 %v1336_v38, %v487_v25 }
 0x999   :  { %v581_v39 = vpop.permute.xlu1 %580 }
 0x99a   :  { %v583_v40 = vmul.f32 %v1336_v38, %v581_v39 }
 0x99c   :  { %585 = vrot.lane.b32.xlu0 %v583_v40, %s1391_s14 }
 0xa0e   :  { %v586_v42 = vpop.permute.xlu0 %585 }
 0xa0f   :  { %v588_v44 = vadd.f32 %v586_v42, %v578_v41 }
 0xa11   :  { %1337 = vtanh.f32 %v588_v44 }
 0xa1b   :  { %v1338_v45 = vpop.eup %1337 }
 0xa1c   :  { %591 = vrot.lane.b32.xlu1 %v1338_v45, %s1390_s11 }
 0xa8e   :  { %v592_v46 = vpop.permute.xlu1 %591 }
 0xa8f   :  { %v594_v47 = vmul.f32 %v1336_v38, %v592_v46 }
 0xa91   :  { %596 = vrot.lane.b32.xlu0 %v594_v47, %s1391_s14 }
 0xb03   :  { %v597_v48 = vpop.permute.xlu0 %596 }
 0xb04   :  { %1198 = vmatmul.mubr.msk.f32.vlgmr.msra.gmra.mrb[10].mxu0 %vm189_vm2, %v597_v48 }
 0xb05   :  { %1282 = vmatpush1.bf16.msra.mxu0 %v1464_v8  ;;  %866 = vmatprep.mubr.f32.mxu0 %v1389_v3 }
 0xb06   :  { %1284 = vmatprep.subr.bf16.mxu0 %v1479_v12 }
 0xb09   :  { %1286 = vmatpush1.bf16.msra.mxu0 %v1489_v15 }
 0xb0a   :  { %1296 = vmatprep.subr.bf16.mxu0 %v1453_v4 }
 0xbd7   :  { %v666_v50 = vpop.f32.mrb[10].mxu0 }
 0xbd8   :  { %v671_v51 = vadd.f32 %v666_v50, %v169_v49  ;;  %v1602_v52 = vpop.f32.mrb[11].mxu0 }
 0xbda   :  { %1339 = vtanh.f32 %v671_v51  ;;  %v1199_v54 = vmul.f32 -1.442695, %v671_v51 }
 0xbdc   :  { %1341 = vpow2.f32 %v1199_v54 }
 0xbe4   :  { %v1340_v53 = vpop.eup %1339 }
 0xbe5   :  { %681 = vrot.lane.b32.xlu1 %v1340_v53, %s1390_s11 }
 0xbe6   :  { %v1342_v55 = vpop.eup %1341 }
 0xbe7   :  { %v675_v56 = vadd.f32 1.0, %v1342_v55  ;;  %v184_v55 = vadd.f32 %v1564_v5, %v1511_v18 }
 0xbe9   :  { %1343 = vrcp.f32 %v675_v56  ;;  %v1090_v56 = vadd.f32 %v1616_v7, %v1588_v33 }
 0xbf3   :  { %v1344_v57 = vpop.eup %1343 }
 0xbf4   :  { %v679_v4 = vmul.f32 %v1344_v57, %v588_v44 }
 0xc57   :  { %v682_v58 = vpop.permute.xlu1 %681 }
 0xc58   :  { %v684_v59 = vmul.f32 %v1344_v57, %v682_v58 }
 0xc5a   :  { %686 = vrot.lane.b32.xlu0 %v684_v59, %s1391_s14 }
 0xccc   :  { %v687_v60 = vpop.permute.xlu0 %686 }
 0xccd   :  { %v689_v61 = vadd.f32 %v687_v60, %v679_v4  ;;  %v1099_v60 = vsel %vm1096_vm3, %v1090_v56, -inf }
 0xccf   :  { %1345 = vtanh.f32 %v689_v61 }
 0xcd9   :  { %v1346_v62 = vpop.eup %1345 }
 0xcda   :  { %692 = vrot.lane.b32.xlu1 %v1346_v62, %s1390_s11 }
 0xd4c   :  { %v693_v63 = vpop.permute.xlu1 %692 }
 0xd4d   :  { %v695_v0 = vmul.f32 %v1344_v57, %v693_v63 }
 0xd4f   :  { %697 = vrot.lane.b32.xlu0 %v695_v0, %s1391_s14 }
 0xdc1   :  { %v698_v2 = vpop.permute.xlu0 %697 }
 0xdc2   :  { %1200 = vmatmul.mubr.msk.f32.vlgmr.msra.gmra.mrb[6].mxu1 %vm189_vm2, %v698_v2 }
 0xdc3   :  { %1290 = vmatpush1.bf16.msra.mxu1 %v1464_v8  ;;  %967 = vmatprep.mubr.f32.mxu1 %v1389_v3 }
 0xdc4   :  { %1292 = vmatprep.subr.bf16.mxu1 %v1479_v12 }
 0xdc7   :  { %1294 = vmatpush1.bf16.msra.mxu1 %v1489_v15 }
 0xe95   :  { %v767_v11 = vpop.f32.mrb[6].mxu1 }
 0xe96   :  { %v772_v14 = vadd.f32 %v767_v11, %v174_v9  ;;  %v769_v16 = vpop.f32.mrb[7].mxu1 }
 0xe97   :  { %v1625_v17 = vadd.f32 %v1616_v7, %v769_v16 }
 0xe98   :  { %1347 = vtanh.f32 %v772_v14  ;;  %v1201_v43 = vmul.f32 -1.442695, %v772_v14 }
 0xe99   :  { %v1101_v20 = vsel %vm1096_vm3, %v1625_v17, -inf }
 0xe9a   :  { %v1102_v21 = vmax.f32 %v1097_v19, %v1101_v20  ;;  %1349 = vpow2.f32 %v1201_v43 }
 0xea2   :  { %v1348_v1 = vpop.eup %1347 }
 0xea3   :  { %782 = vrot.lane.b32.xlu1 %v1348_v1, %s1390_s11 }
 0xea4   :  { %v1350_v22 = vpop.eup %1349 }
 0xea5   :  { %v776_v23 = vadd.f32 1.0, %v1350_v22  ;;  %v1091_v22 = vadd.f32 %v1616_v7, %v1602_v52 }
 0xea7   :  { %1351 = vrcp.f32 %v776_v23 }
 0xeb1   :  { %v1352_v24 = vpop.eup %1351 }
 0xeb2   :  { %v780_v27 = vmul.f32 %v1352_v24, %v689_v61 }
 0xf15   :  { %v783_v25 = vpop.permute.xlu1 %782 }
 0xf16   :  { %v785_v26 = vmul.f32 %v1352_v24, %v783_v25 }
 0xf18   :  { %787 = vrot.lane.b32.xlu0 %v785_v26, %s1391_s14  ;;  %v1100_v26 = vsel %vm1096_vm3, %v1091_v22, -inf }
 0xf8a   :  { %v788_v28 = vpop.permute.xlu0 %787 }
 0xf8b   :  { %v790_v29 = vadd.f32 %v788_v28, %v780_v27 }
 0xf8d   :  { %1353 = vtanh.f32 %v790_v29 }
 0xf97   :  { %v1354_v30 = vpop.eup %1353 }
 0xf98   :  { %793 = vrot.lane.b32.xlu1 %v1354_v30, %s1390_s11 }
0x100a   :  { %v794_v31 = vpop.permute.xlu1 %793 }
0x100b   :  { %v796_v32 = vmul.f32 %v1352_v24, %v794_v31 }
0x100d   :  { %798 = vrot.lane.b32.xlu0 %v796_v32, %s1391_s14 }
0x107f   :  { %v799_v34 = vpop.permute.xlu0 %798 }
0x1080   :  { %1202 = vmatmul.mubr.msk.f32.vlgmr.msra.gmra.mrb[12].mxu0 %vm189_vm2, %v799_v34 }
0x1081   :  { %1298 = vmatpush1.bf16.msra.mxu0 %v1464_v8  ;;  %1075 = vmatprep.mubr.f32.mxu0 %v1389_v3  ;;  %v1098_v3 = vsel %vm1096_vm3, %v1644_v36, -inf }
0x1082   :  { %1300 = vmatprep.subr.bf16.mxu0 %v1479_v12 }
0x1085   :  { %1302 = vmatpush1.bf16.msra.mxu0 %v1489_v15 }
0x1153   :  { %v868_v37 = vpop.f32.mrb[12].mxu0 }
0x1154   :  { %v873_v38 = vadd.f32 %v868_v37, %v179_v35  ;;  %v870_v39 = vpop.f32.mrb[13].mxu0 }
0x1155   :  { %v1647_v40 = vadd.f32 %v1616_v7, %v870_v39 }
0x1156   :  { %1355 = vtanh.f32 %v873_v38  ;;  %v1203_v13 = vmul.f32 -1.442695, %v873_v38 }
0x1157   :  { %v1103_v8 = vsel %vm1096_vm3, %v1647_v40, -inf }
0x1158   :  { %v1104_v12 = vmax.f32 %v1098_v3, %v1103_v8  ;;  %1357 = vpow2.f32 %v1203_v13 }
0x115a   :  { %v1653_v15 = vmax.f32 %v1102_v21, %v1104_v12 }
0x1160   :  { %v1356_v6 = vpop.eup %1355 }
0x1161   :  { %883 = vrot.lane.b32.xlu1 %v1356_v6, %s1390_s11 }
0x1162   :  { %v1358_v41 = vpop.eup %1357 }
0x1163   :  { %v877_v42 = vadd.f32 1.0, %v1358_v41 }
0x1165   :  { %1359 = vrcp.f32 %v877_v42 }
0x116f   :  { %v1360_v44 = vpop.eup %1359 }
0x1170   :  { %v881_v47 = vmul.f32 %v1360_v44, %v790_v29 }
0x11d3   :  { %v884_v45 = vpop.permute.xlu1 %883 }
0x11d4   :  { %v886_v46 = vmul.f32 %v1360_v44, %v884_v45 }
0x11d6   :  { %888 = vrot.lane.b32.xlu0 %v886_v46, %s1391_s14 }
0x1248   :  { %v889_v48 = vpop.permute.xlu0 %888 }
0x1249   :  { %v891_v49 = vadd.f32 %v889_v48, %v881_v47 }
0x124b   :  { %1361 = vtanh.f32 %v891_v49 }
0x1255   :  { %v1362_v50 = vpop.eup %1361 }
0x1256   :  { %894 = vrot.lane.b32.xlu1 %v1362_v50, %s1390_s11 }
0x12c8   :  { %v895_v51 = vpop.permute.xlu1 %894 }
0x12c9   :  { %v897_v53 = vmul.f32 %v1360_v44, %v895_v51 }
0x12cb   :  { %899 = vrot.lane.b32.xlu0 %v897_v53, %s1391_s14 }
0x133d   :  { %v900_v54 = vpop.permute.xlu0 %899 }
0x133e   :  { %1204 = vmatmul.mubr.msk.f32.vlgmr.msra.gmra.mrb[8].mxu1 %vm189_vm2, %v900_v54 }
0x1411   :  { %v969_v57 = vpop.f32.mrb[8].mxu1 }
0x1412   :  { %v974_v58 = vadd.f32 %v969_v57, %v184_v55  ;;  %v971_v59 = vpop.f32.mrb[9].mxu1 }
0x1413   :  { %v1094_v4 = vadd.f32 %v1616_v7, %v971_v59 }
0x1414   :  { %1363 = vtanh.f32 %v974_v58  ;;  %v1205_v0 = vmul.f32 -1.442695, %v974_v58 }
0x1415   :  { %v1105_v61 = vsel %vm1096_vm3, %v1094_v4, -inf }
0x1416   :  { %v1106_v62 = vmax.f32 %v1099_v60, %v1105_v61  ;;  %1365 = vpow2.f32 %v1205_v0 }
0x141e   :  { %v1364_v63 = vpop.eup %1363 }
0x141f   :  { %984 = vrot.lane.b32.xlu1 %v1364_v63, %s1390_s11 }
0x1420   :  { %v1366_v18 = vpop.eup %1365 }
0x1421   :  { %v978_v5 = vadd.f32 1.0, %v1366_v18 }
0x1423   :  { %1367 = vrcp.f32 %v978_v5 }
0x142d   :  { %v1368_v33 = vpop.eup %1367 }
0x142e   :  { %v982_v11 = vmul.f32 %v1368_v33, %v891_v49 }
0x1491   :  { %v985_v2 = vpop.permute.xlu1 %984 }
0x1492   :  { %v987_v9 = vmul.f32 %v1368_v33, %v985_v2 }
0x1494   :  { %989 = vrot.lane.b32.xlu0 %v987_v9, %s1391_s14 }
0x1506   :  { %v990_v14 = vpop.permute.xlu0 %989 }
0x1507   :  { %v992_v16 = vadd.f32 %v990_v14, %v982_v11 }
0x1509   :  { %1369 = vtanh.f32 %v992_v16 }
0x1513   :  { %v1370_v19 = vpop.eup %1369 }
0x1514   :  { %995 = vrot.lane.b32.xlu1 %v1370_v19, %s1390_s11 }
0x1518   :  { %1005 = vrot.lane.b32.xlu1 %v992_v16, %s1392_s4 }
0x1586   :  { %v996_v20 = vpop.permute.xlu1 %995 }
0x1587   :  { %v998_v21 = vmul.f32 %v1368_v33, %v996_v20 }
0x1589   :  { %1000 = vrot.lane.b32.xlu0 %v998_v21, %s1391_s14 }
0x158a   :  { %v1006_v1 = vpop.permute.xlu1 %1005 }
0x158b   :  { %1008 = vst.msk [vmem:[%s1737_s9] sm:$0xff] %vm189_vm2, %v1006_v1 }
0x15fb   :  { %v1001_v43 = vpop.permute.xlu0 %1000 }
0x15fc   :  { %1003 = vst.msk [vmem:[%s1738_s8] sm:$0xff] %vm189_vm2, %v1001_v43  ;;  %1206 = vmatmul.mubr.msk.f32.vlgmr.msra.gmra.mrb[14].mxu0 %vm189_vm2, %v1001_v43 }
0x16cf   :  { %v1077_v23 = vpop.f32.mrb[14].mxu0 }
0x16d0   :  { %v1078_v24 = vpop.f32.mrb[15].mxu0 }
0x16d1   :  { %v1095_v25 = vadd.f32 %v1616_v7, %v1078_v24 }
0x16d3   :  { %v1107_v27 = vsel %vm1096_vm3, %v1095_v25, -inf }
0x16d4   :  { %v1108_v28 = vmax.f32 %v1100_v26, %v1107_v27 }
0x16d6   :  { %v1110_v29 = vmax.f32 %v1106_v62, %v1108_v28 }
0x16d8   :  { %v1111_v30 = vmax.f32 %v1653_v15, %v1110_v29 }
0x16da   :  { %v1112_v31 = vsub.f32 %v1622_v10, %v1111_v30  ;;  %v1113_v32 = vsub.f32 %v1644_v36, %v1111_v30  ;;  %v1114_v34 = vsub.f32 %v1090_v56, %v1111_v30  ;;  %v1115_v35 = vsub.f32 %v1091_v22, %v1111_v30 }
0x16db   :  { %v1116_v52 = vsub.f32 %v1625_v17, %v1111_v30  ;;  %v1117_v37 = vsub.f32 %v1647_v40, %v1111_v30  ;;  %v1118_v38 = vsub.f32 %v1094_v4, %v1111_v30  ;;  %v1119_v7 = vsub.f32 %v1095_v25, %v1111_v30 }
0x16dc   :  { %v1120_v39 = vmul.f32 1.442695, %v1112_v31  ;;  %v1122_v3 = vmul.f32 1.442695, %v1113_v32  ;;  %v1124_v8 = vmul.f32 1.442695, %v1114_v34 }
0x16dd   :  { %v1126_v12 = vmul.f32 1.442695, %v1115_v35  ;;  %v1128_v6 = vmul.f32 1.442695, %v1116_v52  ;;  %v1130_v10 = vmul.f32 1.442695, %v1117_v37 }
0x16de   :  { %1371 = vpow2.f32 %v1120_v39  ;;  %v1132_v36 = vmul.f32 1.442695, %v1118_v38  ;;  %v1134_v15 = vmul.f32 1.442695, %v1119_v7 }
0x16df   :  { %1373 = vpow2.f32 %v1122_v3 }
0x16e0   :  { %1375 = vpow2.f32 %v1124_v8 }
0x16e1   :  { %1377 = vpow2.f32 %v1126_v12 }
0x16e2   :  { %1379 = vpow2.f32 %v1128_v6 }
0x16e3   :  { %1381 = vpow2.f32 %v1130_v10 }
0x16e4   :  { %1383 = vpow2.f32 %v1132_v36 }
0x16e5   :  { %1385 = vpow2.f32 %v1134_v15 }
0x16e8   :  { %v1372_v17 = vpop.eup %1371 }
0x16e9   :  { %v1374_v13 = vpop.eup %1373  ;;  %v1136_v40 = vsel %vm1096_vm3, %v1372_v17, 0.0 }
0x16ea   :  { %v1376_v41 = vpop.eup %1375  ;;  %v1137_v42 = vsel %vm1096_vm3, %v1374_v13, 0.0 }
0x16eb   :  { %v1378_v44 = vpop.eup %1377  ;;  %v1138_v45 = vadd.f32 %v1137_v42, %v1136_v40  ;;  %v1139_v46 = vsel %vm1096_vm3, %v1376_v41, 0.0 }
0x16ec   :  { %v1380_v47 = vpop.eup %1379  ;;  %v1141_v49 = vsel %vm1096_vm3, %v1378_v44, 0.0 }
0x16ed   :  { %v1140_v48 = vadd.f32 %v1139_v46, %v1138_v45  ;;  %v1382_v50 = vpop.eup %1381  ;;  %v1143_v53 = vsel %vm1096_vm3, %v1380_v47, 0.0 }
0x16ee   :  { %v1384_v54 = vpop.eup %1383  ;;  %v1145_v56 = vsel %vm1096_vm3, %v1382_v50, 0.0 }
0x16ef   :  { %v1142_v51 = vadd.f32 %v1141_v49, %v1140_v48  ;;  %v1386_v57 = vpop.eup %1385  ;;  %v1147_v59 = vsel %vm1096_vm3, %v1384_v54, 0.0 }
0x16f0   :  { %v1149_v60 = vsel %vm1096_vm3, %v1386_v57, 0.0 }
0x16f1   :  { %v1144_v55 = vadd.f32 %v1143_v53, %v1142_v51 }
0x16f3   :  { %v1146_v58 = vadd.f32 %v1145_v56, %v1144_v55 }
0x16f5   :  { %v1148_v4 = vadd.f32 %v1147_v59, %v1146_v58 }
0x16f7   :  { %v1150_v61 = vadd.f32 %v1149_v60, %v1148_v4 }
0x16f9   :  { %1387 = vrcp.f32 %v1150_v61 }
0x1703   :  { %v1388_v62 = vpop.eup %1387 }
0x1704   :  { %v1152_v63 = vmul.f32 %v1388_v62, %v1372_v17  ;;  %v1153_v0 = vmul.f32 %v1388_v62, %v1374_v13  ;;  %v1154_v18 = vmul.f32 %v1388_v62, %v1376_v41  ;;  %v1155_v5 = vmul.f32 %v1388_v62, %v1378_v44 }
0x1705   :  { %v1156_v33 = vmul.f32 %v1388_v62, %v1380_v47  ;;  %v1157_v2 = vmul.f32 %v1388_v62, %v1382_v50  ;;  %v1158_v9 = vmul.f32 %v1388_v62, %v1384_v54  ;;  %v1159_v11 = vmul.f32 %v1388_v62, %v1386_v57 }
0x1706   :  { %1160 = vst.msk [vmem:[%s1739_s7] sm:$0xff] %vm1096_vm3, %v1152_v63  ;;  %1161 = vst.msk [vmem:[%s1739_s7 + $0x8] sm:$0xff] %vm1096_vm3, %v1153_v0 }
0x1707   :  { %1162 = vst.msk [vmem:[%s1739_s7 + $0x10] sm:$0xff] %vm1096_vm3, %v1154_v18  ;;  %1163 = vst.msk [vmem:[%s1739_s7 + $0x18] sm:$0xff] %vm1096_vm3, %v1155_v5 }
0x1708   :  { %1164 = vst.msk [vmem:[%s1739_s7 + $0x20] sm:$0xff] %vm1096_vm3, %v1156_v33  ;;  %1165 = vst.msk [vmem:[%s1739_s7 + $0x28] sm:$0xff] %vm1096_vm3, %v1157_v2 }
0x1709   :  { %1166 = vst.msk [vmem:[%s1739_s7 + $0x30] sm:$0xff] %vm1096_vm3, %v1158_v9  ;;  %1167 = vst.msk [vmem:[%s1739_s7 + $0x38] sm:$0xff] %vm1096_vm3, %v1159_v11 }

</bundles_post_ra>
